<compile_context>
chip_gen: v7x
topology: tpu7x:2x2x1
jax: 0.10.0
libtpu: 0.0.40
codegen_flags: <defaults>
</compile_context>

<pallas_src>
import math
import jax
import jax.numpy as jnp
from jax.experimental import pallas as pl
from jax.experimental.pallas import tpu as pltpu

_LN_EPS = 1e-5
_INV_SQRT2 = 1.0 / math.sqrt(2.0)


def _round_up(v, m):
    return ((v + m - 1) // m) * m


def _make_kernel(c_true, c_pad):
    """Kernel closure: knows the true channel count for masked LN stats."""
    need_mask = c_pad != c_true
    inv_c = 1.0 / float(c_true)

    def kernel(x_ref, gamma_ref, beta_ref, w1_ref, b1_ref, w2_ref, b2_ref, o_ref):
        # ---- LayerNorm over the (true) last dim, f32 ----
        x = x_ref[...].astype(jnp.float32)                      # (tm, Cp)
        if need_mask:
            lane = jax.lax.broadcasted_iota(jnp.int32, x.shape, 1)
            valid = lane < c_true
            xm = jnp.where(valid, x, 0.0)
        else:
            xm = x
        mean = jnp.sum(xm, axis=-1, keepdims=True) * inv_c
        cen = xm - mean
        if need_mask:
            cen = jnp.where(valid, cen, 0.0)
        var = jnp.sum(cen * cen, axis=-1, keepdims=True) * inv_c
        # gamma/beta are zero on padded lanes, so xn == 0 there.
        xn = cen * jax.lax.rsqrt(var + _LN_EPS) * gamma_ref[...] + beta_ref[...]

        # ---- proj: Linear -> GELU(exact erf) -> Linear, bf16 MXU / f32 acc ----
        h = jnp.dot(xn.astype(jnp.bfloat16), w1_ref[...],
                    preferred_element_type=jnp.float32) + b1_ref[...]
        h = 0.5 * h * (1.0 + jax.lax.erf(h * _INV_SQRT2))        # torch nn.GELU()
        y = jnp.dot(h.astype(jnp.bfloat16), w2_ref[...],
                    preferred_element_type=jnp.float32) + b2_ref[...]

        # ---- residual: normalized x + proj(normalized x) ----
        o_ref[...] = (xn + y).astype(o_ref.dtype)

    return kernel


def _choose_row_tile(m_rows, c_pad):
    """Pick an MXU-aligned row tile from a per-generation VMEM budget.

    Returns (row_tile, vmem_limit_bytes)."""
    try:
        info = pltpu.get_tpu_info()
        cap = int(getattr(info, "vmem_capacity_bytes", 64 << 20))
    except Exception:  # conservative fallback
        cap = 64 << 20
    is_v7x_like = cap <= (64 << 20)          # 64 MiB/TC => 2 TensorCores/chip
    if is_v7x_like:
        budget = cap - (12 << 20)            # internal-scratch headroom
    else:
        budget = min(cap, 128 << 20) - (28 << 20)   # ~100 MiB on v5e/v6e
    limit = min(budget + (8 << 20), cap)

    # Resident operands are charged at 2x: constant index_maps avoid re-DMA but
    # Pallas still allocates pipeline buffers per BlockSpec.
    weight_bytes = 2 * (2 * c_pad * c_pad * 2)      # W1 + W2, bf16, double-buffered
    param_bytes = 2 * (4 * c_pad * 4)               # gamma/beta/b1/b2, f32
    avail = budget - weight_bytes - param_bytes
    if avail <= 0:
        # TODO(synk): hidden-dim (output-column) weight tiling needed here.
        avail = 8 << 20

    # Per-row live bytes: double-buffered f32 x + out tiles, f32 xn/h/y temps,
    # two bf16 cast copies, +4 B/elem headroom.
    per_row = c_pad * (2 * 4 + 2 * 4 + 3 * 4 + 2 * 2 + 4)
    tile = min(512, max(16, avail // per_row))

    rows_needed = _round_up(m_rows, 16)
    if is_v7x_like and rows_needed >= 512:
        # Keep >= 2 grid steps so the "parallel" row axis can shard across the
        # two TensorCores.  (No-op clamp on single-TC v5e/v6e.)
        half = _round_up(-(-rows_needed // 2), 256)
        tile = min(tile, max(256, half))

    # MXU-edge alignment: full 256-row passes when large, >= 16 always.
    if tile >= 256:
        tile = (tile // 256) * 256
    elif tile >= 128:
        tile = 128
    else:
        tile = max(16, (tile // 16) * 16)

    tile = min(tile, rows_needed)
    tile = max(16, (tile // 16) * 16)
    return int(tile), int(limit)


def simple_res_block(x, gamma, beta, w1, b1, w2, b2, *, row_tile=None):
    """x: (B, S, C).  w1/w2: (C, C) pre-transposed to (in, out); pass them as
    bf16 to avoid a per-call cast (f32 is also accepted and cast once here)."""
    B, S, C = x.shape
    M = B * S
    Cp = max(128, _round_up(C, 128))          # lane-dense channel dim
    x2d = x.reshape(M, C)

    if row_tile is None:
        row_tile, vmem_limit = _choose_row_tile(M, Cp)
    else:
        _, vmem_limit = _choose_row_tile(M, Cp)
    m_pad = pl.cdiv(M, row_tile) * row_tile

    # Zero-pad rows and channels.  Padded rows produce finite garbage that is
    # sliced off; padded channels are exactly zero through the whole pipeline
    # (masked LN stats + zero gamma/beta/bias/weight padding).
    if m_pad != M or Cp != C:
        x2d = jnp.pad(x2d, ((0, m_pad - M), (0, Cp - C)))

    def pad_vec(v):
        v = v.reshape(1, C).astype(jnp.float32)
        return jnp.pad(v, ((0, 0), (0, Cp - C))) if Cp != C else v

    def pad_w(w):
        w = w if w.dtype == jnp.bfloat16 else w.astype(jnp.bfloat16)
        return jnp.pad(w, ((0, Cp - C), (0, Cp - C))) if Cp != C else w

    gamma2, beta2 = pad_vec(gamma), pad_vec(beta)
    b1_2, b2_2 = pad_vec(b1), pad_vec(b2)
    w1_bf, w2_bf = pad_w(w1), pad_w(w2)

    cost = pl.CostEstimate(
        flops=2 * 2 * m_pad * Cp * Cp + 12 * m_pad * Cp,    # two matmuls + elementwise
        transcendentals=m_pad * Cp,                          # erf in GELU
        bytes_accessed=2 * m_pad * Cp * 4 + 2 * Cp * Cp * 2 + 4 * Cp * 4,
    )

    out = pl.pallas_call(
        _make_kernel(C, Cp),
        out_shape=jax.ShapeDtypeStruct((m_pad, Cp), x.dtype),
        grid_spec=pltpu.PrefetchScalarGridSpec(
            num_scalar_prefetch=0,
            grid=(m_pad // row_tile,),
            in_specs=[
                pl.BlockSpec((row_tile, Cp), lambda i: (i, 0)),  # x rows (pipelined)
                pl.BlockSpec((1, Cp), lambda i: (0, 0)),          # gamma (resident)
                pl.BlockSpec((1, Cp), lambda i: (0, 0)),          # beta  (resident)
                pl.BlockSpec((Cp, Cp), lambda i: (0, 0)),         # W1 bf16 (resident)
                pl.BlockSpec((1, Cp), lambda i: (0, 0)),          # b1    (resident)
                pl.BlockSpec((Cp, Cp), lambda i: (0, 0)),         # W2 bf16 (resident)
                pl.BlockSpec((1, Cp), lambda i: (0, 0)),          # b2    (resident)
            ],
            out_specs=pl.BlockSpec((row_tile, Cp), lambda i: (i, 0)),
        ),
        compiler_params=pltpu.CompilerParams(
            dimension_semantics=("parallel",),
            vmem_limit_bytes=vmem_limit,
        ),
        cost_estimate=cost,
    )(x2d, gamma2, beta2, w1_bf, b1_2, w2_bf, b2_2)

    return out[:M, :C].reshape(B, S, C)


def _reference(x, gamma, beta, w1, b1, w2, b2):
    """f32 / exact-erf reference matching torch SimpleResBlock semantics."""
    mean = jnp.mean(x, axis=-1, keepdims=True)
    var = jnp.mean((x - mean) ** 2, axis=-1, keepdims=True)
    xn = (x - mean) * jax.lax.rsqrt(var + _LN_EPS) * gamma + beta
    h = xn @ w1 + b1
    h = 0.5 * h * (1.0 + jax.lax.erf(h * _INV_SQRT2))   # torch nn.GELU() default
    y = h @ w2 + b2
    return xn + y


if __name__ == "__main__":
    B, S, C = 2, 8, 32   # channels = 32

    key = jax.random.PRNGKey(0)
    kx, kw1, kb1, kw2, kb2 = jax.random.split(key, 5)

    x = jax.random.normal(kx, (B, S, C), dtype=jnp.float32)

    # Deterministic synthetic params; shapes match nn.LayerNorm(C) and two
    # nn.Linear(C, C).  Linear weights stored as (in, out).
    gamma = jnp.ones((C,), dtype=jnp.float32)
    beta = jnp.zeros((C,), dtype=jnp.float32)
    lim = 1.0 / math.sqrt(C)
    w1 = jax.random.uniform(kw1, (C, C), jnp.float32, -lim, lim)
    b1 = jax.random.uniform(kb1, (C,), jnp.float32, -lim, lim)
    w2 = jax.random.uniform(kw2, (C, C), jnp.float32, -lim, lim)
    b2 = jax.random.uniform(kb2, (C,), jnp.float32, -lim, lim)

    # Hoisted one-time bf16 weight cast (repeated callers should keep these).
    w1_bf = w1.astype(jnp.bfloat16)
    w2_bf = w2.astype(jnp.bfloat16)

    out = simple_res_block(x, gamma, beta, w1_bf, b1, w2_bf, b2)
    out = jax.block_until_ready(out)

    ref = _reference(x, gamma, beta, w1, b1, w2, b2)
    assert out.shape == (B, S, C)
    # Tolerance covers bf16 matmul operands vs the f32 reference.
    assert jnp.allclose(out, ref, atol=5e-2, rtol=5e-2), "mismatch vs reference"

    print("KERNEL_OK")
</pallas_src>

<mosaic_0001>
module attributes {stable_mosaic.version = 11 : i64} {
  func.func @kernel(%arg0: i32, %arg1: memref<16x128xf32, #tpu.memory_space<vmem>>, %arg2: memref<1x128xf32, #tpu.memory_space<vmem>>, %arg3: memref<1x128xf32, #tpu.memory_space<vmem>>, %arg4: memref<128x128xbf16, #tpu.memory_space<vmem>>, %arg5: memref<1x128xf32, #tpu.memory_space<vmem>>, %arg6: memref<128x128xbf16, #tpu.memory_space<vmem>>, %arg7: memref<1x128xf32, #tpu.memory_space<vmem>>, %arg8: memref<16x128xf32, #tpu.memory_space<vmem>>) attributes {dimension_semantics = [#tpu.dimension_semantics<parallel>], iteration_bounds = array<i64: 1>, scalar_prefetch = 0 : i64, scratch_operands = 0 : i64, tpu.core_type = #tpu.core_type<tc>, window_params = [{transform_indices = @transform_0, window_bounds = array<i64: 16, 128>}, {pipeline_mode = #tpu.pipeline_mode<synchronous>, transform_indices = @transform_1, window_bounds = array<i64: 1, 128>}, {pipeline_mode = #tpu.pipeline_mode<synchronous>, transform_indices = @transform_2, window_bounds = array<i64: 1, 128>}, {pipeline_mode = #tpu.pipeline_mode<synchronous>, transform_indices = @transform_3, window_bounds = array<i64: 128, 128>}, {pipeline_mode = #tpu.pipeline_mode<synchronous>, transform_indices = @transform_4, window_bounds = array<i64: 1, 128>}, {pipeline_mode = #tpu.pipeline_mode<synchronous>, transform_indices = @transform_5, window_bounds = array<i64: 128, 128>}, {pipeline_mode = #tpu.pipeline_mode<synchronous>, transform_indices = @transform_6, window_bounds = array<i64: 1, 128>}, {transform_indices = @transform_7, window_bounds = array<i64: 16, 128>}]} {
    %c0 = arith.constant 0 : index
    %c0_0 = arith.constant 0 : index
    %0 = vector.load %arg1[%c0, %c0_0] : memref<16x128xf32, #tpu.memory_space<vmem>>, vector<16x128xf32>
    %1 = tpu.iota {dimensions = array<i32: 1>} : vector<16x128xi32>
    %c32_i32 = arith.constant 32 : i32
    %2 = vector.broadcast %c32_i32 : i32 to vector<16x128xi32>
    %3 = arith.cmpi slt, %1, %2 : vector<16x128xi32>
    %cst = arith.constant 0.000000e+00 : f32
    %4 = vector.broadcast %cst : f32 to vector<16x128xf32>
    %5 = arith.select %3, %0, %4 : vector<16x128xi1>, vector<16x128xf32>
    %cst_1 = arith.constant dense<0.000000e+00> : vector<16xf32>
    %6 = vector.multi_reduction <add>, %5, %cst_1 [1] : vector<16x128xf32> to vector<16xf32>
    %7 = vector.shape_cast %6 : vector<16xf32> to vector<16x1xf32>
    %cst_2 = arith.constant 3.125000e-02 : f32
    %8 = vector.broadcast %cst_2 : f32 to vector<16x1xf32>
    %9 = arith.mulf %7, %8 : vector<16x1xf32>
    %10 = vector.broadcast %9 : vector<16x1xf32> to vector<16x128xf32>
    %11 = arith.subf %5, %10 : vector<16x128xf32>
    %cst_3 = arith.constant 0.000000e+00 : f32
    %12 = vector.broadcast %cst_3 : f32 to vector<16x128xf32>
    %13 = arith.select %3, %11, %12 : vector<16x128xi1>, vector<16x128xf32>
    %14 = arith.mulf %13, %13 : vector<16x128xf32>
    %cst_4 = arith.constant dense<0.000000e+00> : vector<16xf32>
    %15 = vector.multi_reduction <add>, %14, %cst_4 [1] : vector<16x128xf32> to vector<16xf32>
    %16 = vector.shape_cast %15 : vector<16xf32> to vector<16x1xf32>
    %cst_5 = arith.constant 3.125000e-02 : f32
    %17 = vector.broadcast %cst_5 : f32 to vector<16x1xf32>
    %18 = arith.mulf %16, %17 : vector<16x1xf32>
    %cst_6 = arith.constant 9.99999974E-6 : f32
    %19 = vector.broadcast %cst_6 : f32 to vector<16x1xf32>
    %20 = arith.addf %18, %19 : vector<16x1xf32>
    %21 = math.rsqrt %20 : vector<16x1xf32>
    %22 = vector.broadcast %21 : vector<16x1xf32> to vector<16x128xf32>
    %23 = arith.mulf %13, %22 : vector<16x128xf32>
    %c0_7 = arith.constant 0 : index
    %c0_8 = arith.constant 0 : index
    %24 = vector.load %arg2[%c0_7, %c0_8] : memref<1x128xf32, #tpu.memory_space<vmem>>, vector<1x128xf32>
    %25 = vector.broadcast %24 : vector<1x128xf32> to vector<16x128xf32>
    %26 = arith.mulf %23, %25 : vector<16x128xf32>
    %c0_9 = arith.constant 0 : index
    %c0_10 = arith.constant 0 : index
    %27 = vector.load %arg3[%c0_9, %c0_10] : memref<1x128xf32, #tpu.memory_space<vmem>>, vector<1x128xf32>
    %28 = vector.broadcast %27 : vector<1x128xf32> to vector<16x128xf32>
    %29 = arith.addf %26, %28 : vector<16x128xf32>
    %30 = arith.truncf %29 : vector<16x128xf32> to vector<16x128xbf16>
    %c0_11 = arith.constant 0 : index
    %c0_12 = arith.constant 0 : index
    %31 = vector.load %arg4[%c0_11, %c0_12] : memref<128x128xbf16, #tpu.memory_space<vmem>>, vector<128x128xbf16>
    %cst_13 = arith.constant dense<0.000000e+00> : vector<16x128xf32>
    %32 = tpu.matmul %30, %31, %cst_13 {dimension_numbers = #tpu.dot_dimension_numbers<[1], [0], [0], [1], [0, 0, 1, 1], [], []>} : vector<16x128xbf16>, vector<128x128xbf16>, vector<16x128xf32> -> vector<16x128xf32>
    %c0_14 = arith.constant 0 : index
    %c0_15 = arith.constant 0 : index
    %33 = vector.load %arg5[%c0_14, %c0_15] : memref<1x128xf32, #tpu.memory_space<vmem>>, vector<1x128xf32>
    %34 = vector.broadcast %33 : vector<1x128xf32> to vector<16x128xf32>
    %35 = arith.addf %32, %34 : vector<16x128xf32>
    %cst_16 = arith.constant 5.000000e-01 : f32
    %36 = vector.broadcast %cst_16 : f32 to vector<16x128xf32>
    %37 = arith.mulf %36, %35 : vector<16x128xf32>
    %cst_17 = arith.constant 0.707106769 : f32
    %38 = vector.broadcast %cst_17 : f32 to vector<16x128xf32>
    %39 = arith.mulf %35, %38 : vector<16x128xf32>
    %40 = math.erf %39 : vector<16x128xf32>
    %cst_18 = arith.constant 1.000000e+00 : f32
    %41 = vector.broadcast %cst_18 : f32 to vector<16x128xf32>
    %42 = arith.addf %41, %40 : vector<16x128xf32>
    %43 = arith.mulf %37, %42 : vector<16x128xf32>
    %44 = arith.truncf %43 : vector<16x128xf32> to vector<16x128xbf16>
    %c0_19 = arith.constant 0 : index
    %c0_20 = arith.constant 0 : index
    %45 = vector.load %arg6[%c0_19, %c0_20] : memref<128x128xbf16, #tpu.memory_space<vmem>>, vector<128x128xbf16>
    %cst_21 = arith.constant dense<0.000000e+00> : vector<16x128xf32>
    %46 = tpu.matmul %44, %45, %cst_21 {dimension_numbers = #tpu.dot_dimension_numbers<[1], [0], [0], [1], [0, 0, 1, 1], [], []>} : vector<16x128xbf16>, vector<128x128xbf16>, vector<16x128xf32> -> vector<16x128xf32>
    %c0_22 = arith.constant 0 : index
    %c0_23 = arith.constant 0 : index
    %47 = vector.load %arg7[%c0_22, %c0_23] : memref<1x128xf32, #tpu.memory_space<vmem>>, vector<1x128xf32>
    %48 = vector.broadcast %47 : vector<1x128xf32> to vector<16x128xf32>
    %49 = arith.addf %46, %48 : vector<16x128xf32>
    %50 = arith.addf %29, %49 : vector<16x128xf32>
    %c0_24 = arith.constant 0 : index
    %c0_25 = arith.constant 0 : index
    %51 = vector.load %arg8[%c0_24, %c0_25] : memref<16x128xf32, #tpu.memory_space<vmem>>, vector<16x128xf32>
    tpu.vector_store %arg8[%c0_24, %c0_25], %50 {strides = array<i32>} : memref<16x128xf32, #tpu.memory_space<vmem>>, vector<16x128xf32>,
    return
  }
  func.func @transform_0(%arg0: i32) -> (i32, i32) {
    %c0_i32 = arith.constant 0 : i32
    %c0_i32_0 = arith.constant 0 : i32
    return %arg0, %c0_i32 : i32, i32
  }
  func.func @transform_1(%arg0: i32) -> (i32, i32) {
    %c0_i32 = arith.constant 0 : i32
    %c0_i32_0 = arith.constant 0 : i32
    %c0_i32_1 = arith.constant 0 : i32
    return %c0_i32, %c0_i32_0 : i32, i32
  }
  func.func @transform_2(%arg0: i32) -> (i32, i32) {
    %c0_i32 = arith.constant 0 : i32
    %c0_i32_0 = arith.constant 0 : i32
    %c0_i32_1 = arith.constant 0 : i32
    return %c0_i32, %c0_i32_0 : i32, i32
  }
  func.func @transform_3(%arg0: i32) -> (i32, i32) {
    %c0_i32 = arith.constant 0 : i32
    %c0_i32_0 = arith.constant 0 : i32
    %c0_i32_1 = arith.constant 0 : i32
    return %c0_i32, %c0_i32_0 : i32, i32
  }
  func.func @transform_4(%arg0: i32) -> (i32, i32) {
    %c0_i32 = arith.constant 0 : i32
    %c0_i32_0 = arith.constant 0 : i32
    %c0_i32_1 = arith.constant 0 : i32
    return %c0_i32, %c0_i32_0 : i32, i32
  }
  func.func @transform_5(%arg0: i32) -> (i32, i32) {
    %c0_i32 = arith.constant 0 : i32
    %c0_i32_0 = arith.constant 0 : i32
    %c0_i32_1 = arith.constant 0 : i32
    return %c0_i32, %c0_i32_0 : i32, i32
  }
  func.func @transform_6(%arg0: i32) -> (i32, i32) {
    %c0_i32 = arith.constant 0 : i32
    %c0_i32_0 = arith.constant 0 : i32
    %c0_i32_1 = arith.constant 0 : i32
    return %c0_i32, %c0_i32_0 : i32, i32
  }
  func.func @transform_7(%arg0: i32) -> (i32, i32) {
    %c0_i32 = arith.constant 0 : i32
    %c0_i32_0 = arith.constant 0 : i32
    return %arg0, %c0_i32 : i32, i32
  }
}

</mosaic_0001>

<bundles_post_ra>
// kernel: tpu_custom_call.1
= control target key start
LH: loop header
LB: loop body
LE: loop exit
PB: predicated region body
PF: predicated region fallthrough
CT: control target
= control target key end

     0   :  { %12 = vsyncpa [#allocation3], 0  ;;  %s726_s0 = inlined_call_operand.hbm [shape: f32[16,128], index: 0, kind: input, shape index: {}]   ;;  %s727_s1 = inlined_call_operand.vmem [shape: f32[1,128], index: 1, kind: input, shape index: {}]   ;;  %s728_s2 = inlined_call_operand.vmem [shape: f32[1,128], index: 2, kind: input, shape index: {}]   ;;  %s729_s3 = inlined_call_operand.hbm [shape: bf16[128,128], index: 3, kind: input, shape index: {}]   ;;  %s730_s4 = inlined_call_operand.vmem [shape: f32[1,128], index: 4, kind: input, shape index: {}]   ;;  %s731_s5 = inlined_call_operand.hbm [shape: bf16[128,128], index: 5, kind: input, shape index: {}]   ;;  %s732_s6 = inlined_call_operand.vmem [shape: f32[1,128], index: 6, kind: input, shape index: {}]   ;;  %s733_s7 = inlined_call_operand.hbm [shape: f32[16,128], index: 7, kind: output, shape index: {}]  }
   0x1   :  { %13 = vsyncpa [#allocation6], 0 }
   0x2   :  { %14 = vsyncpa [#allocation4], 0  ;;  %s582_s24 = smov [#allocation5]   ;;  %s488_s28 = scalar_lea.hbm %s729_s3, 1024 }
   0x3   :  { %s36_s25 = sshll.u32 %s582_s24, 4  ;;  %p489_p0 = scmp.ne.s32.totalorder %s729_s3, %s488_s28  ;;  %s37_s25 = int_to_ptr.vmem [resolvable:$true] %s36_s25 }
   0x4   :  { %p492_p1 = scmp.lt.u32.totalorder %s488_s28, %s729_s3 }
   0x6   :  { %p494_p2 = pnand %p492_p1, %p489_p0 }
   0x8   :  { %497 = shalt.err (!%p494_p2)
}
   0x9   :  { %s498_s10 = scalar_lea.vmem %s37_s25, 1024  ;;  %p503_p4 = scmp.lt.s32.totalorder %s37_s25, %s37_s25 }
   0xa   :  { %p499_p3 = scmp.ne.s32.totalorder %s37_s25, %s498_s10  ;;  %p504_p5 = scmp.lt.s32.totalorder %s498_s10, %s498_s10 }
   0xc   :  { %p505_p6 = por %p504_p5, %p503_p4 }
   0xe   :  { %p506_p7 = pnand %p505_p6, %p499_p3 }
  0x10   :  { %509 = shalt.err (!%p506_p7)
}
  0x11   :  { %s583_s11 = smov 64   ;;  %s584_s12 = smov 4  }
  0x12   :  { %42 = dma.hbm_to_vmem [thread:$0]  %s729_s3, 1024, %s37_s25, [#allocation6], %s583_s11, %s583_s11, %s584_s12  }
  0x13   :  { %s585_s15 = smov [#allocation2]   ;;  %s510_s19 = scalar_lea.hbm %s726_s0, 256 }
  0x14   :  { %s20_s16 = sshll.u32 %s585_s15, 4  ;;  %p511_p8 = scmp.ne.s32.totalorder %s726_s0, %s510_s19  ;;  %s21_s16 = int_to_ptr.vmem [resolvable:$true] %s20_s16 }
  0x15   :  { %p514_p9 = scmp.lt.u32.totalorder %s510_s19, %s726_s0 }
  0x17   :  { %p516_p10 = pnand %p514_p9, %p511_p8 }
  0x19   :  { %519 = shalt.err (!%p516_p10)
}
  0x1a   :  { %s520_s24 = scalar_lea.vmem %s21_s16, 256  ;;  %p525_p12 = scmp.lt.s32.totalorder %s21_s16, %s21_s16 }
  0x1b   :  { %p521_p11 = scmp.ne.s32.totalorder %s21_s16, %s520_s24  ;;  %p526_p13 = scmp.lt.s32.totalorder %s520_s24, %s520_s24 }
  0x1d   :  { %p527_p0 = por %p526_p13, %p525_p12 }
  0x1f   :  { %p528_p1 = pnand %p527_p0, %p521_p11 }
  0x21   :  { %531 = shalt.err (!%p528_p1)
}
  0x22   :  { %s586_s3 = smov 128   ;;  %s587_s25 = smov 8  }
  0x23   :  { %26 = dma.hbm_to_vmem [thread:$0]  %s726_s0, 256, %s21_s16, [#allocation3], %s586_s3, %s586_s3, %s587_s25  }
  0x24   :  { %s588_s28 = smov [#allocation7]   ;;  %s532_s9 = scalar_lea.hbm %s731_s5, 1024 }
  0x25   :  { %s50_s29 = sshll.u32 %s588_s28, 4  ;;  %p533_p2 = scmp.ne.s32.totalorder %s731_s5, %s532_s9  ;;  %s51_s29 = int_to_ptr.vmem [resolvable:$true] %s50_s29 }
  0x26   :  { %p536_p3 = scmp.lt.u32.totalorder %s532_s9, %s731_s5 }
  0x28   :  { %p538_p4 = pnand %p536_p3, %p533_p2 }
  0x2a   :  { %541 = shalt.err (!%p538_p4)
}
  0x2b   :  { %s542_s17 = scalar_lea.vmem %s51_s29, 1024  ;;  %p547_p6 = scmp.lt.s32.totalorder %s51_s29, %s51_s29 }
  0x2c   :  { %p543_p5 = scmp.ne.s32.totalorder %s51_s29, %s542_s17  ;;  %p548_p7 = scmp.lt.s32.totalorder %s542_s17, %s542_s17 }
  0x2e   :  { %p549_p8 = por %p548_p7, %p547_p6 }
  0x30   :  { %p550_p9 = pnand %p549_p8, %p543_p5 }
  0x32   :  { %553 = shalt.err (!%p550_p9)
}
  0x33   :  { %56 = dma.hbm_to_vmem [thread:$0]  %s731_s5, 1024, %s51_s29, [#allocation6], %s583_s11, %s583_s11, %s584_s12  }
  0x34   :  { %576 = dma.done.wait [#allocation3], 256  }
  0x35   :  { %577 = vsyncadd [#allocation3], 4294967040 }
  0x36   :  { %578 = dma.done.wait [#allocation6], 2048  }
  0x37   :  { %579 = vsyncadd [#allocation6], 4294965248  ;;  %v71_v0 = vlaneseq  ;;  %v69_v2 = vld [vmem:[#allocation2] sm:$0xff]  ;;  %v70_v3 = vld [vmem:[#allocation2 + $0x8] sm:$0xff]  ;;  %v589_v7 = vmov 0.0   ;;  %vm590_vm1 = vmmov 0  }
  0x38   :  { %v464_v6 = vld [vmem:[#allocation5] sm:$0xff]   ;;  %414 = vmatprep.subr.bf16.mxu0 %v589_v7  ;;  %434 = vmatprep.subr.bf16.mxu1 %v589_v7  ;;  %v465_v18 = vld [vmem:[#allocation5 + $0x8] sm:$0xff]   ;;  %v466_v19 = vld [vmem:[#allocation5 + $0x10] sm:$0xff]   ;;  %s591_s20 = smov [#allocation8]  }
  0x39   :  { %v72_v1 = vand.u32 127, %v71_v0  ;;  %415 = vmatpush3.bf16.msra.mxu0 %v464_v6  ;;  %v467_v20 = vld [vmem:[#allocation5 + $0x18] sm:$0xff]   ;;  %v468_v21 = vld [vmem:[#allocation5 + $0x20] sm:$0xff]   ;;  %430 = vmatprep.mubr.msk.bf16.mxu0 %vm590_vm1, %v589_v7  ;;  %v469_v22 = vld [vmem:[#allocation5 + $0x28] sm:$0xff]   ;;  %s363_s21 = sshll.u32 %s591_s20, 4  ;;  %s364_s21 = int_to_ptr.vmem [resolvable:$true] %s363_s21 }
  0x3a   :  { %416 = vmatprep.subr.bf16.mxu0 %v589_v7  ;;  %450 = vmatprep.mubr.msk.bf16.mxu1 %vm590_vm1, %v589_v7  ;;  %v470_v23 = vld [vmem:[#allocation5 + $0x30] sm:$0xff]   ;;  %v471_v24 = vld [vmem:[#allocation5 + $0x38] sm:$0xff]   ;;  %v472_v25 = vld [vmem:[#allocation7] sm:$0xff]   ;;  %s554_s22 = scalar_lea.vmem %s364_s21, 256  ;;  %p559_p11 = scmp.lt.s32.totalorder %s364_s21, %s364_s21 }
  0x3b   :  { %vm73_vm0 = vcmp.lt.s32.totalorder %v72_v1, 32  ;;  %435 = vmatpush3.bf16.msra.mxu1 %v472_v25  ;;  %v473_v26 = vld [vmem:[#allocation7 + $0x8] sm:$0xff]   ;;  %v376_v35 = vld [vmem:[%s727_s1] ss:$0 sm:$0xff]  ;;  %v475_v45 = vld [vmem:[#allocation7 + $0x18] sm:$0xff]   ;;  %p555_p10 = scmp.ne.s32.totalorder %s364_s21, %s554_s22  ;;  %p560_p12 = scmp.lt.s32.totalorder %s554_s22, %s554_s22 }
  0x3c   :  { %v74_v4 = vsel %vm73_vm0, %v69_v2, 0.0  ;;  %v75_v5 = vsel %vm73_vm0, %v70_v3, 0.0  ;;  %436 = vmatprep.subr.bf16.mxu1 %v589_v7  ;;  %v377_v39 = vld [vmem:[%s728_s2] ss:$0 sm:$0xff]  ;;  %v476_v46 = vld [vmem:[#allocation7 + $0x20] sm:$0xff]   ;;  %v477_v47 = vld [vmem:[#allocation7 + $0x28] sm:$0xff]  }
  0x3d   :  { %76 = vadd.xlane.f32.xlu0 %v74_v4  ;;  %417 = vmatpush3.bf16.msra.mxu0 %v465_v18  ;;  %v474_v44 = vld [vmem:[#allocation7 + $0x10] sm:$0xff]   ;;  %v479_v49 = vld [vmem:[#allocation7 + $0x38] sm:$0xff]   ;;  %p561_p13 = por %p560_p12, %p559_p11 }
  0x3e   :  { %418 = vmatprep.subr.bf16.mxu0 %v589_v7  ;;  %v478_v48 = vld [vmem:[#allocation7 + $0x30] sm:$0xff]  }
  0x3f   :  { %437 = vmatpush3.bf16.msra.mxu1 %v473_v26  ;;  %v378_v50 = vld [vmem:[%s730_s4] ss:$0 sm:$0xff]  ;;  %p562_p0 = pnand %p561_p13, %p555_p10 }
  0x40   :  { %438 = vmatprep.subr.bf16.mxu1 %v589_v7 }
  0x41   :  { %78 = vadd.xlane.f32.xlu0 %v75_v5  ;;  %419 = vmatpush3.bf16.msra.mxu0 %v466_v19 }
  0x42   :  { %420 = vmatprep.subr.bf16.mxu0 %v589_v7 }
  0x43   :  { %439 = vmatpush3.bf16.msra.mxu1 %v474_v44 }
  0x44   :  { %440 = vmatprep.subr.bf16.mxu1 %v589_v7 }
  0x45   :  { %421 = vmatpush3.bf16.msra.mxu0 %v467_v20 }
  0x46   :  { %422 = vmatprep.subr.bf16.mxu0 %v589_v7 }
  0x47   :  { %441 = vmatpush3.bf16.msra.mxu1 %v475_v45 }
  0x48   :  { %442 = vmatprep.subr.bf16.mxu1 %v589_v7 }
  0x49   :  { %423 = vmatpush3.bf16.msra.mxu0 %v468_v21 }
  0x4a   :  { %424 = vmatprep.subr.bf16.mxu0 %v589_v7 }
  0x4b   :  { %443 = vmatpush3.bf16.msra.mxu1 %v476_v46 }
  0x4c   :  { %444 = vmatprep.subr.bf16.mxu1 %v589_v7 }
  0x4d   :  { %425 = vmatpush3.bf16.msra.mxu0 %v469_v22 }
  0x4e   :  { %426 = vmatprep.subr.bf16.mxu0 %v589_v7 }
  0x4f   :  { %445 = vmatpush3.bf16.msra.mxu1 %v477_v47 }
  0x50   :  { %446 = vmatprep.subr.bf16.mxu1 %v589_v7 }
  0x51   :  { %427 = vmatpush3.bf16.msra.mxu0 %v470_v23 }
  0x52   :  { %428 = vmatprep.subr.bf16.mxu0 %v589_v7 }
  0x53   :  { %447 = vmatpush3.bf16.msra.mxu1 %v478_v48 }
  0x54   :  { %448 = vmatprep.subr.bf16.mxu1 %v589_v7 }
  0x55   :  { %429 = vmatpush3.bf16.msra.mxu0 %v471_v24 }
  0x57   :  { %449 = vmatpush3.bf16.msra.mxu1 %v479_v49 }
  0xca   :  { %v77_v8 = vpop.xlane.xlu0 %76 }
  0xcb   :  { %v80_v9 = vmul.f32 0.03125, %v77_v8 }
  0xcd   :  { %v82_v10 = vsub.f32 %v74_v4, %v80_v9  ;;  %v387_v4 = vld [vmem:[%s732_s6] ss:$0 sm:$0xff] }
  0xce   :  { %v79_v11 = vpop.xlane.xlu0 %78 }
  0xcf   :  { %v81_v12 = vmul.f32 0.03125, %v79_v11  ;;  %v84_v13 = vsel %vm73_vm0, %v82_v10, 0.0 }
  0xd0   :  { %v86_v14 = vmul.f32 %v84_v13, %v84_v13 }
  0xd1   :  { %v83_v15 = vsub.f32 %v75_v5, %v81_v12 }
  0xd2   :  { %88 = vadd.xlane.f32.xlu1 %v86_v14 }
  0xd3   :  { %v85_v16 = vsel %vm73_vm0, %v83_v15, 0.0 }
  0xd4   :  { %v87_v17 = vmul.f32 %v85_v16, %v85_v16 }
  0xd6   :  { %90 = vadd.xlane.f32.xlu1 %v87_v17 }
 0x15f   :  { %v89_v27 = vpop.xlane.xlu1 %88 }
 0x160   :  { %v92_v28 = vmul.f32 0.03125, %v89_v27 }
 0x162   :  { %v94_v29 = vadd.f32 1e-05, %v92_v28 }
 0x163   :  { %v91_v30 = vpop.xlane.xlu1 %90 }
 0x164   :  { %480 = vrsqrt.f32 %v94_v29  ;;  %v93_v31 = vmul.f32 0.03125, %v91_v30 }
 0x166   :  { %v95_v32 = vadd.f32 1e-05, %v93_v31 }
 0x168   :  { %482 = vrsqrt.f32 %v95_v32 }
 0x16e   :  { %v481_v33 = vpop.eup %480 }
 0x16f   :  { %v98_v34 = vmul.f32 %v481_v33, %v84_v13 }
 0x171   :  { %v107_v38 = vmul.f32 %v376_v35, %v98_v34 }
 0x172   :  { %v483_v36 = vpop.eup %482 }
 0x173   :  { %v99_v37 = vmul.f32 %v483_v36, %v85_v16  ;;  %v116_v41 = vadd.f32 %v377_v39, %v107_v38 }
 0x175   :  { %v108_v40 = vmul.f32 %v376_v35, %v99_v37 }
 0x177   :  { %v117_v42 = vadd.f32 %v377_v39, %v108_v40 }
 0x179   :  { %v118_v43 = vpack.c.bf16 %v117_v42, %v116_v41 }
 0x17b   :  { %431 = vmatmul.mubr.bf16.vlgmr.msra.gmra.mrb[0].mxu0 %v118_v43 }
 0x24e   :  { %v224_v51 = vpop.f32.mrb[0].mxu0 }
 0x24f   :  { %v225_v52 = vadd.f32 %v378_v50, %v224_v51  ;;  %v432_v53 = vpop.f32.mrb[1].mxu0 }
 0x250   :  { %v227_v54 = vpop.f32.mrb[2].mxu0 }
 0x251   :  { %v233_v55 = vmul.f32 0.70710677, %v225_v52  ;;  %v228_v56 = vadd.f32 %v378_v50, %v227_v54  ;;  %v433_v57 = vpop.f32.mrb[3].mxu0  ;;  %v231_v62 = vmul.f32 0.5, %v225_v52 }
 0x253   :  { %484 = verf.f32 %v233_v55  ;;  %v234_v58 = vmul.f32 0.70710677, %v228_v56  ;;  %v232_v63 = vmul.f32 0.5, %v228_v56 }
 0x255   :  { %486 = verf.f32 %v234_v58 }
 0x25d   :  { %v485_v59 = vpop.eup %484 }
 0x25e   :  { %v237_v60 = vadd.f32 1.0, %v485_v59 }
 0x25f   :  { %v487_v61 = vpop.eup %486 }
 0x260   :  { %v238_v0 = vadd.f32 1.0, %v487_v61  ;;  %v239_v1 = vmul.f32 %v237_v60, %v231_v62 }
 0x262   :  { %v240_v2 = vmul.f32 %v238_v0, %v232_v63 }
 0x264   :  { %v241_v3 = vpack.c.bf16 %v240_v2, %v239_v1 }
 0x266   :  { %451 = vmatmul.mubr.bf16.vlgmr.msra.gmra.mrb[0].mxu1 %v241_v3 }
 0x339   :  { %v347_v5 = vpop.f32.mrb[0].mxu1 }
 0x33a   :  { %v348_v6 = vadd.f32 %v387_v4, %v347_v5  ;;  %v452_v7 = vpop.f32.mrb[1].mxu1 }
 0x33b   :  { %v350_v8 = vpop.f32.mrb[2].mxu1 }
 0x33c   :  { %v354_v9 = vadd.f32 %v348_v6, %v116_v41  ;;  %v351_v10 = vadd.f32 %v387_v4, %v350_v8  ;;  %v453_v11 = vpop.f32.mrb[3].mxu1 }
 0x33e   :  { %356 = vst [vmem:[#allocation8] sm:$0xff] %v354_v9  ;;  %v355_v12 = vadd.f32 %v351_v10, %v117_v42 }
 0x340   :  { %357 = vst [vmem:[#allocation8 + $0x8] sm:$0xff] %v355_v12 }
 0x341   :  { %565 = shalt.err (!%p562_p0)
}
 0x342   :  { %s566_s24 = scalar_lea.hbm %s733_s7, 256 }
 0x343   :  { %p567_p1 = scmp.ne.s32.totalorder %s733_s7, %s566_s24  ;;  %p570_p2 = scmp.lt.u32.totalorder %s566_s24, %s733_s7 }
 0x345   :  { %p572_p3 = pnand %p570_p2, %p567_p1 }
 0x347   :  { %575 = shalt.err (!%p572_p3)
}
 0x348   :  { %369 = dma.vmem_to_hbm [thread:$0]  %s364_s21, 256, %s733_s7, [#allocation4], %s586_s3, %s586_s3, %s587_s25  }
 0x349   :  { %580 = dma.done.wait [#allocation4], 256  }
 0x34a   :  { %581 = vsyncadd [#allocation4], 4294967040 }
 0x34b   :  { %373 = vsyncpa [#allocation3], 1 }
 0x34c   :  { %374 = vsyncpa [#allocation6], 1 }
 0x34d   :  { %375 = vsyncpa [#allocation4], 1 }

</bundles_post_ra>
